<compile_context>
chip_gen: v5e
topology: v5e:2x2
jax: 0.10.0
libtpu: 0.0.40
codegen_flags: <defaults>
</compile_context>

<pallas_src>
import functools

import jax
import jax.numpy as jnp
from jax.experimental import pallas as pl
from jax.experimental.pallas import tpu as pltpu

_LANES = 128  # boxes per lane-row


# --------------------------------------------------------------------------
# Tiling heuristics
# --------------------------------------------------------------------------
def _max_row_tile():
    """Largest row tile (rows of 128 boxes) that fits the default scoped VMEM."""
    try:
        kind = jax.devices()[0].device_kind.lower()
    except Exception:
        return 1024
    if ("v6" in kind) or ("v7" in kind):
        # (2,4,2048,128) f32 = 8 MiB/input/step, ~18-19 MiB double-buffered
        # incl. output -> fits the 32 MiB default scoped VMEM on v6e / v7x.
        return 2048
    # v5e (16 MiB default scoped VMEM) and unknown chips: stay at 1024.
    return 1024


def _choose_tiling(rows, max_row_tile, multiple):
    """Balanced tiling: minimal padding waste, >=2 grid steps when possible."""
    num_tiles = max(1, -(-rows // max_row_tile))
    # Guarantee >=2 grid steps whenever there is enough work so the "parallel"
    # grid axis can be sharded across v7x's two TensorCores.
    if num_tiles == 1 and rows >= 2 * multiple:
        num_tiles = 2
    r_tile = -(-rows // num_tiles)
    r_tile = -(-r_tile // multiple) * multiple
    return r_tile, num_tiles


def _prep_dtype(pred, target):
    dtype = jnp.result_type(pred.dtype, target.dtype)
    if dtype in (jnp.dtype(jnp.float32), jnp.dtype(jnp.bfloat16)):
        return dtype
    return jnp.dtype(jnp.float32)


# --------------------------------------------------------------------------
# Kernel body
# --------------------------------------------------------------------------
def _box_loss(px, py, pw, ph, tx, ty, tw, th, *, loss_type):
    """Per-box loss on (r_tile, 128) f32 component planes."""
    phw = pw * 0.5
    phh = ph * 0.5
    thw = tw * 0.5
    thh = th * 0.5

    p_tl_x = px - phw
    p_tl_y = py - phh
    p_br_x = px + phw
    p_br_y = py + phh
    t_tl_x = tx - thw
    t_tl_y = ty - thh
    t_br_x = tx + thw
    t_br_y = ty + thh

    # intersection
    tl_x = jnp.maximum(p_tl_x, t_tl_x)
    tl_y = jnp.maximum(p_tl_y, t_tl_y)
    br_x = jnp.minimum(p_br_x, t_br_x)
    br_y = jnp.minimum(p_br_y, t_br_y)

    # max(.,0)*max(.,0) == prod(br-tl)*prod(tl<br)
    area_i = jnp.maximum(br_x - tl_x, 0.0) * jnp.maximum(br_y - tl_y, 0.0)
    area_u = pw * ph + tw * th - area_i
    iou = area_i / (area_u + 1e-16)

    if loss_type == "iou":
        return 1.0 - iou * iou

    # enclosing box (giou / diou / focal_diou)
    c_tl_x = jnp.minimum(p_tl_x, t_tl_x)
    c_tl_y = jnp.minimum(p_tl_y, t_tl_y)
    c_br_x = jnp.maximum(p_br_x, t_br_x)
    c_br_y = jnp.maximum(p_br_y, t_br_y)
    ex = c_br_x - c_tl_x
    ey = c_br_y - c_tl_y

    if loss_type == "giou":
        area_c = ex * ey
        giou = iou - (area_c - area_u) / jnp.maximum(area_c, 1e-16)
        return 1.0 - jnp.clip(giou, -1.0, 1.0)

    if loss_type in ("diou", "focal_diou"):
        dx = px - tx
        dy = py - ty
        line_d = jnp.sqrt(dx * dx + dy * dy)      # EUP sqrt (free slot)
        line_e = jnp.sqrt(ex * ex + ey * ey)
        # clamp AFTER the sqrt, exactly like the PyTorch reference
        d = line_d / jnp.maximum(line_e, 1e-16)
        diou = iou - d
        if loss_type == "diou":
            return 1.0 - jnp.clip(diou, -1.0, 1.0)
        confidence = (diou + 1.0) * 0.5
        f = 1.0 - 0.5 * confidence
        return 3.088 * f * f * (1.0 - diou)

    raise ValueError(f"unknown loss_type: {loss_type}")


def _load_planes(boxes_ref):
    # boxes_ref: (2, 4, r_tile, 128); planes cast to f32 on loaded vregs
    return [boxes_ref[b, c].astype(jnp.float32) for b in range(2) for c in range(4)]


def _iou_loss_map_kernel(boxes_ref, loss_ref, *, loss_type):
    planes = _load_planes(boxes_ref)
    loss_ref[...] = _box_loss(*planes, loss_type=loss_type)   # lane-dense slab


def _iou_loss_reduce_kernel(boxes_ref, partial_ref, *, loss_type, n):
    planes = _load_planes(boxes_ref)
    loss = _box_loss(*planes, loss_type=loss_type)             # (r_tile, 128)
    r_tile, lanes = loss.shape
    # mask the padded tail (padded zero-boxes would otherwise contribute 1.0)
    row = jax.lax.broadcasted_iota(jnp.int32, (r_tile, lanes), 0)
    lane = jax.lax.broadcasted_iota(jnp.int32, (r_tile, lanes), 1)
    idx = (pl.program_id(0) * r_tile + row) * lanes + lane
    loss = jnp.where(idx < n, loss, 0.0)
    # per-grid-step partial sum -> tiny (8, 128) writeback per step
    partial_ref[0] = loss.reshape(r_tile // 8, 8, lanes).sum(axis=0)


# --------------------------------------------------------------------------
# pallas_call wrappers
# --------------------------------------------------------------------------
def _run_planar(boxes, n, *, reduction, loss_type, r_tile):
    """boxes: (2, 4, rows_pad, 128) stacked component-major pred/target."""
    _, _, rows_pad, lanes = boxes.shape
    grid_len = rows_pad // r_tile
    n_pad = rows_pad * lanes
    in_bytes = boxes.size * boxes.dtype.itemsize
    in_specs = [pl.BlockSpec((2, 4, r_tile, lanes), lambda i: (0, 0, i, 0))]
    cparams = pltpu.CompilerParams(dimension_semantics=("parallel",))

    if reduction in ("mean", "sum"):
        kernel = functools.partial(_iou_loss_reduce_kernel, loss_type=loss_type, n=n)
        partials = pl.pallas_call(
            kernel,
            out_shape=jax.ShapeDtypeStruct((grid_len, 8, lanes), jnp.float32),
            grid_spec=pl.GridSpec(
                grid=(grid_len,),
                in_specs=in_specs,
                out_specs=pl.BlockSpec((1, 8, lanes), lambda i: (i, 0, 0)),
            ),
            compiler_params=cparams,
            cost_estimate=pl.CostEstimate(
                flops=45 * n_pad,
                transcendentals=2 * n_pad,
                bytes_accessed=in_bytes + grid_len * 8 * lanes * 4,
            ),
        )(boxes)
        total = jnp.sum(partials)
        if reduction == "mean":
            total = total / jnp.float32(n)
        return total

    kernel = functools.partial(_iou_loss_map_kernel, loss_type=loss_type)
    loss_pad = pl.pallas_call(
        kernel,
        out_shape=jax.ShapeDtypeStruct((rows_pad, lanes), jnp.float32),
        grid_spec=pl.GridSpec(
            grid=(grid_len,),
            in_specs=in_specs,
            out_specs=pl.BlockSpec((r_tile, lanes), lambda i: (i, 0)),
        ),
        compiler_params=cparams,
        cost_estimate=pl.CostEstimate(
            flops=45 * n_pad,
            transcendentals=2 * n_pad,
            bytes_accessed=in_bytes + 4 * n_pad,
        ),
    )(boxes)
    return loss_pad.reshape(-1)[:n]


def iou_loss(pred, target, *, reduction="none", loss_type="giou"):
    """Pallas TPU implementation of yolox IOUloss.forward for (N, 4) boxes."""
    assert pred.shape[0] == target.shape[0]
    pred = jnp.asarray(pred).reshape(-1, 4)
    target = jnp.asarray(target).reshape(-1, 4)
    n = pred.shape[0]
    if n == 0:
        return jnp.zeros((0,), jnp.float32) if reduction == "none" else jnp.float32(0.0)

    dtype = _prep_dtype(pred, target)
    multiple = 8 if dtype == jnp.dtype(jnp.float32) else 16
    rows = -(-n // _LANES)
    r_tile, grid_len = _choose_tiling(rows, _max_row_tile(), multiple)
    rows_pad = r_tile * grid_len
    n_pad = rows_pad * _LANES

    # Single fused prep pass: stack pred/target, pad N, go component-major.
    # TODO(synk): this is still one extra HBM read+write of the boxes; callers
    # holding component-major (4, N) boxes should use iou_loss_planar instead.
    boxes = jnp.stack([pred.astype(dtype), target.astype(dtype)])        # (2, n, 4)
    boxes = jnp.pad(boxes, ((0, 0), (0, n_pad - n), (0, 0)))
    boxes = boxes.transpose(0, 2, 1).reshape(2, 4, rows_pad, _LANES)
    return _run_planar(boxes, n, reduction=reduction, loss_type=loss_type, r_tile=r_tile)


def iou_loss_planar(pred, target, *, reduction="none", loss_type="giou"):
    """Same loss for component-major (4, N) boxes (rows = cx, cy, w, h).

    Skips the (N,4) -> planar transpose pass; only padding (if N is not
    tile-aligned) remains as wrapper-side data movement.
    """
    assert pred.shape == target.shape and pred.shape[0] == 4
    n = pred.shape[1]
    if n == 0:
        return jnp.zeros((0,), jnp.float32) if reduction == "none" else jnp.float32(0.0)

    dtype = _prep_dtype(pred, target)
    multiple = 8 if dtype == jnp.dtype(jnp.float32) else 16
    rows = -(-n // _LANES)
    r_tile, grid_len = _choose_tiling(rows, _max_row_tile(), multiple)
    rows_pad = r_tile * grid_len
    n_pad = rows_pad * _LANES

    boxes = jnp.stack([jnp.asarray(pred).astype(dtype),
                       jnp.asarray(target).astype(dtype)])               # (2, 4, n)
    boxes = jnp.pad(boxes, ((0, 0), (0, 0), (0, n_pad - n)))
    boxes = boxes.reshape(2, 4, rows_pad, _LANES)
    return _run_planar(boxes, n, reduction=reduction, loss_type=loss_type, r_tile=r_tile)


# --------------------------------------------------------------------------
# Pure-JAX reference (mirrors the PyTorch forward) for sanity checking.
# --------------------------------------------------------------------------
def _reference_iou_loss(pred, target, *, reduction="none", loss_type="giou"):
    pred = pred.reshape(-1, 4).astype(jnp.float32)
    target = target.reshape(-1, 4).astype(jnp.float32)
    tl = jnp.maximum(pred[:, :2] - pred[:, 2:] / 2, target[:, :2] - target[:, 2:] / 2)
    br = jnp.minimum(pred[:, :2] + pred[:, 2:] / 2, target[:, :2] + target[:, 2:] / 2)
    area_p = jnp.prod(pred[:, 2:], 1)
    area_g = jnp.prod(target[:, 2:], 1)
    en = jnp.prod((tl < br).astype(tl.dtype), axis=1)
    area_i = jnp.prod(br - tl, 1) * en
    area_u = area_p + area_g - area_i
    iou = area_i / (area_u + 1e-16)
    if loss_type == "iou":
        loss = 1 - iou ** 2
    elif loss_type == "giou":
        c_tl = jnp.minimum(pred[:, :2] - pred[:, 2:] / 2, target[:, :2] - target[:, 2:] / 2)
        c_br = jnp.maximum(pred[:, :2] + pred[:, 2:] / 2, target[:, :2] + target[:, 2:] / 2)
        area_c = jnp.prod(c_br - c_tl, 1)
        giou = iou - (area_c - area_u) / jnp.maximum(area_c, 1e-16)
        loss = 1 - jnp.clip(giou, -1.0, 1.0)
    elif loss_type in ("diou", "focal_diou"):
        x_d = (pred[:, 0] - target[:, 0]) ** 2
        y_d = (pred[:, 1] - target[:, 1]) ** 2
        line_d = jnp.sqrt(x_d + y_d)
        c_tl = jnp.minimum(pred[:, :2] - pred[:, 2:] / 2, target[:, :2] - target[:, 2:] / 2)
        c_br = jnp.maximum(pred[:, :2] + pred[:, 2:] / 2, target[:, :2] + target[:, 2:] / 2)
        l_1 = (c_br[:, 0] - c_tl[:, 0]) ** 2
        l_2 = (c_br[:, 1] - c_tl[:, 1]) ** 2
        line_e = jnp.sqrt(l_1 + l_2)
        d = line_d / jnp.maximum(line_e, 1e-16)
        diou = iou - d
        if loss_type == "diou":
            loss = 1 - jnp.clip(diou, -1.0, 1.0)
        else:
            confidence = (diou + 1) / 2
            loss = 3.088 * (1 - 0.5 * confidence) ** 2 * (1 - diou)
    else:
        raise ValueError(loss_type)
    if reduction == "mean":
        loss = loss.mean()
    elif reduction == "sum":
        loss = loss.sum()
    return loss


if __name__ == "__main__":
    key = jax.random.PRNGKey(0)
    k1, k2, k3, k4 = jax.random.split(key, 4)

    # small case: 8 (cx, cy, w, h) boxes
    n_boxes = 8
    pred = jnp.concatenate([
        jax.random.uniform(k1, (n_boxes, 2), minval=0.0, maxval=16.0),
        jax.random.uniform(k2, (n_boxes, 2), minval=1.0, maxval=8.0)], axis=1)
    target = jnp.concatenate([
        jax.random.uniform(k3, (n_boxes, 2), minval=0.0, maxval=16.0),
        jax.random.uniform(k4, (n_boxes, 2), minval=1.0, maxval=8.0)], axis=1)

    for lt in ("giou", "iou", "diou", "focal_diou"):
        out = jax.block_until_ready(iou_loss(pred, target, reduction="none", loss_type=lt))
        ref = _reference_iou_loss(pred, target, reduction="none", loss_type=lt)
        assert out.shape == (n_boxes,)
        assert jnp.allclose(out, ref, atol=1e-5, rtol=1e-5), lt

    # awkward N: exercises multi-step grid, balanced tiling and tail masking
    n_big = 2500
    kb = jax.random.split(jax.random.PRNGKey(1), 4)
    pred_b = jnp.concatenate([
        jax.random.uniform(kb[0], (n_big, 2), minval=0.0, maxval=32.0),
        jax.random.uniform(kb[1], (n_big, 2), minval=1.0, maxval=8.0)], axis=1)
    target_b = jnp.concatenate([
        jax.random.uniform(kb[2], (n_big, 2), minval=0.0, maxval=32.0),
        jax.random.uniform(kb[3], (n_big, 2), minval=1.0, maxval=8.0)], axis=1)

    out = jax.block_until_ready(iou_loss(pred_b, target_b, reduction="none", loss_type="diou"))
    ref = _reference_iou_loss(pred_b, target_b, reduction="none", loss_type="diou")
    assert jnp.allclose(out, ref, atol=1e-5, rtol=1e-5)

    for red in ("mean", "sum"):   # fused in-kernel partial-sum reduction
        out = jax.block_until_ready(iou_loss(pred_b, target_b, reduction=red, loss_type="giou"))
        ref = _reference_iou_loss(pred_b, target_b, reduction=red, loss_type="giou")
        assert jnp.allclose(out, ref, atol=1e-4, rtol=1e-5), red

    # bf16 passthrough (cast to f32 happens inside the kernel)
    pred_h = pred_b.astype(jnp.bfloat16)
    target_h = target_b.astype(jnp.bfloat16)
    out = jax.block_until_ready(iou_loss(pred_h, target_h, reduction="none", loss_type="giou"))
    ref = _reference_iou_loss(pred_h.astype(jnp.float32), target_h.astype(jnp.float32),
                              reduction="none", loss_type="giou")
    assert jnp.allclose(out, ref, atol=1e-5, rtol=1e-5)

    # component-major fast path (skips the (N,4)->planar transpose prep)
    out = jax.block_until_ready(
        iou_loss_planar(pred_b.T, target_b.T, reduction="sum", loss_type="giou"))
    ref = _reference_iou_loss(pred_b, target_b, reduction="sum", loss_type="giou")
    assert jnp.allclose(out, ref, atol=1e-4, rtol=1e-5)

    print("KERNEL_OK")
</pallas_src>

<mosaic_0001>
module attributes {stable_mosaic.version = 11 : i64} {
  func.func @_iou_loss_map_kernel(%arg0: i32, %arg1: memref<2x4x8x128xf32, #tpu.memory_space<vmem>>, %arg2: memref<8x128xf32, #tpu.memory_space<vmem>>) attributes {dimension_semantics = [#tpu.dimension_semantics<parallel>], iteration_bounds = array<i64: 1>, scalar_prefetch = 0 : i64, scratch_operands = 0 : i64, tpu.core_type = #tpu.core_type<tc>, window_params = [{transform_indices = @transform_0, window_bounds = array<i64: 2, 4, 8, 128>}, {transform_indices = @transform_1, window_bounds = array<i64: 8, 128>}]} {
    %c0 = arith.constant 0 : index
    %c0_0 = arith.constant 0 : index
    %c0_1 = arith.constant 0 : index
    %c0_2 = arith.constant 0 : index
    %0 = vector.load %arg1[%c0, %c0_0, %c0_1, %c0_2] : memref<2x4x8x128xf32, #tpu.memory_space<vmem>>, vector<1x1x8x128xf32>
    %1 = vector.shape_cast %0 : vector<1x1x8x128xf32> to vector<8x128xf32>
    %c0_3 = arith.constant 0 : index
    %c1 = arith.constant 1 : index
    %c0_4 = arith.constant 0 : index
    %c0_5 = arith.constant 0 : index
    %2 = vector.load %arg1[%c0_3, %c1, %c0_4, %c0_5] : memref<2x4x8x128xf32, #tpu.memory_space<vmem>>, vector<1x1x8x128xf32>
    %3 = vector.shape_cast %2 : vector<1x1x8x128xf32> to vector<8x128xf32>
    %c0_6 = arith.constant 0 : index
    %c2 = arith.constant 2 : index
    %c0_7 = arith.constant 0 : index
    %c0_8 = arith.constant 0 : index
    %4 = vector.load %arg1[%c0_6, %c2, %c0_7, %c0_8] : memref<2x4x8x128xf32, #tpu.memory_space<vmem>>, vector<1x1x8x128xf32>
    %5 = vector.shape_cast %4 : vector<1x1x8x128xf32> to vector<8x128xf32>
    %c0_9 = arith.constant 0 : index
    %c3 = arith.constant 3 : index
    %c0_10 = arith.constant 0 : index
    %c0_11 = arith.constant 0 : index
    %6 = vector.load %arg1[%c0_9, %c3, %c0_10, %c0_11] : memref<2x4x8x128xf32, #tpu.memory_space<vmem>>, vector<1x1x8x128xf32>
    %7 = vector.shape_cast %6 : vector<1x1x8x128xf32> to vector<8x128xf32>
    %c1_12 = arith.constant 1 : index
    %c0_13 = arith.constant 0 : index
    %c0_14 = arith.constant 0 : index
    %c0_15 = arith.constant 0 : index
    %8 = vector.load %arg1[%c1_12, %c0_13, %c0_14, %c0_15] : memref<2x4x8x128xf32, #tpu.memory_space<vmem>>, vector<1x1x8x128xf32>
    %9 = vector.shape_cast %8 : vector<1x1x8x128xf32> to vector<8x128xf32>
    %c1_16 = arith.constant 1 : index
    %c1_17 = arith.constant 1 : index
    %c0_18 = arith.constant 0 : index
    %c0_19 = arith.constant 0 : index
    %10 = vector.load %arg1[%c1_16, %c1_17, %c0_18, %c0_19] : memref<2x4x8x128xf32, #tpu.memory_space<vmem>>, vector<1x1x8x128xf32>
    %11 = vector.shape_cast %10 : vector<1x1x8x128xf32> to vector<8x128xf32>
    %c1_20 = arith.constant 1 : index
    %c2_21 = arith.constant 2 : index
    %c0_22 = arith.constant 0 : index
    %c0_23 = arith.constant 0 : index
    %12 = vector.load %arg1[%c1_20, %c2_21, %c0_22, %c0_23] : memref<2x4x8x128xf32, #tpu.memory_space<vmem>>, vector<1x1x8x128xf32>
    %13 = vector.shape_cast %12 : vector<1x1x8x128xf32> to vector<8x128xf32>
    %c1_24 = arith.constant 1 : index
    %c3_25 = arith.constant 3 : index
    %c0_26 = arith.constant 0 : index
    %c0_27 = arith.constant 0 : index
    %14 = vector.load %arg1[%c1_24, %c3_25, %c0_26, %c0_27] : memref<2x4x8x128xf32, #tpu.memory_space<vmem>>, vector<1x1x8x128xf32>
    %15 = vector.shape_cast %14 : vector<1x1x8x128xf32> to vector<8x128xf32>
    %cst = arith.constant 5.000000e-01 : f32
    %16 = vector.broadcast %cst : f32 to vector<8x128xf32>
    %17 = arith.mulf %5, %16 : vector<8x128xf32>
    %cst_28 = arith.constant 5.000000e-01 : f32
    %18 = vector.broadcast %cst_28 : f32 to vector<8x128xf32>
    %19 = arith.mulf %7, %18 : vector<8x128xf32>
    %cst_29 = arith.constant 5.000000e-01 : f32
    %20 = vector.broadcast %cst_29 : f32 to vector<8x128xf32>
    %21 = arith.mulf %13, %20 : vector<8x128xf32>
    %cst_30 = arith.constant 5.000000e-01 : f32
    %22 = vector.broadcast %cst_30 : f32 to vector<8x128xf32>
    %23 = arith.mulf %15, %22 : vector<8x128xf32>
    %24 = arith.subf %1, %17 : vector<8x128xf32>
    %25 = arith.subf %3, %19 : vector<8x128xf32>
    %26 = arith.addf %1, %17 : vector<8x128xf32>
    %27 = arith.addf %3, %19 : vector<8x128xf32>
    %28 = arith.subf %9, %21 : vector<8x128xf32>
    %29 = arith.subf %11, %23 : vector<8x128xf32>
    %30 = arith.addf %9, %21 : vector<8x128xf32>
    %31 = arith.addf %11, %23 : vector<8x128xf32>
    %32 = arith.maximumf %24, %28 : vector<8x128xf32>
    %33 = arith.maximumf %25, %29 : vector<8x128xf32>
    %34 = arith.minimumf %26, %30 : vector<8x128xf32>
    %35 = arith.minimumf %27, %31 : vector<8x128xf32>
    %36 = arith.subf %34, %32 : vector<8x128xf32>
    %cst_31 = arith.constant 0.000000e+00 : f32
    %37 = vector.broadcast %cst_31 : f32 to vector<8x128xf32>
    %38 = arith.maximumf %36, %37 : vector<8x128xf32>
    %39 = arith.subf %35, %33 : vector<8x128xf32>
    %cst_32 = arith.constant 0.000000e+00 : f32
    %40 = vector.broadcast %cst_32 : f32 to vector<8x128xf32>
    %41 = arith.maximumf %39, %40 : vector<8x128xf32>
    %42 = arith.mulf %38, %41 : vector<8x128xf32>
    %43 = arith.mulf %5, %7 : vector<8x128xf32>
    %44 = arith.mulf %13, %15 : vector<8x128xf32>
    %45 = arith.addf %43, %44 : vector<8x128xf32>
    %46 = arith.subf %45, %42 : vector<8x128xf32>
    %cst_33 = arith.constant 1.000000e-16 : f32
    %47 = vector.broadcast %cst_33 : f32 to vector<8x128xf32>
    %48 = arith.addf %46, %47 : vector<8x128xf32>
    %49 = arith.divf %42, %48 : vector<8x128xf32>
    %50 = arith.minimumf %24, %28 : vector<8x128xf32>
    %51 = arith.minimumf %25, %29 : vector<8x128xf32>
    %52 = arith.maximumf %26, %30 : vector<8x128xf32>
    %53 = arith.maximumf %27, %31 : vector<8x128xf32>
    %54 = arith.subf %52, %50 : vector<8x128xf32>
    %55 = arith.subf %53, %51 : vector<8x128xf32>
    %56 = arith.mulf %54, %55 : vector<8x128xf32>
    %57 = arith.subf %56, %46 : vector<8x128xf32>
    %cst_34 = arith.constant 1.000000e-16 : f32
    %58 = vector.broadcast %cst_34 : f32 to vector<8x128xf32>
    %59 = arith.maximumf %56, %58 : vector<8x128xf32>
    %60 = arith.divf %57, %59 : vector<8x128xf32>
    %61 = arith.subf %49, %60 : vector<8x128xf32>
    %cst_35 = arith.constant -1.000000e+00 : f32
    %cst_36 = arith.constant 1.000000e+00 : f32
    %62 = vector.broadcast %cst_35 : f32 to vector<8x128xf32>
    %63 = arith.maximumf %62, %61 : vector<8x128xf32>
    %64 = vector.broadcast %cst_36 : f32 to vector<8x128xf32>
    %65 = arith.minimumf %64, %63 : vector<8x128xf32>
    %cst_37 = arith.constant 1.000000e+00 : f32
    %66 = vector.broadcast %cst_37 : f32 to vector<8x128xf32>
    %67 = arith.subf %66, %65 : vector<8x128xf32>
    %c0_38 = arith.constant 0 : index
    %c0_39 = arith.constant 0 : index
    %68 = vector.load %arg2[%c0_38, %c0_39] : memref<8x128xf32, #tpu.memory_space<vmem>>, vector<8x128xf32>
    tpu.vector_store %arg2[%c0_38, %c0_39], %67 {strides = array<i32>} : memref<8x128xf32, #tpu.memory_space<vmem>>, vector<8x128xf32>,
    return
  }
  func.func @transform_0(%arg0: i32) -> (i32, i32, i32, i32) {
    %c0_i32 = arith.constant 0 : i32
    %c0_i32_0 = arith.constant 0 : i32
    %c0_i32_1 = arith.constant 0 : i32
    %c0_i32_2 = arith.constant 0 : i32
    return %c0_i32, %c0_i32_0, %arg0, %c0_i32_1 : i32, i32, i32, i32
  }
  func.func @transform_1(%arg0: i32) -> (i32, i32) {
    %c0_i32 = arith.constant 0 : i32
    %c0_i32_0 = arith.constant 0 : i32
    return %arg0, %c0_i32 : i32, i32
  }
}

</mosaic_0001>

<bundles_post_ra>
// kernel: tpu_custom_call.1
= control target key start
LH: loop header
LB: loop body
LE: loop exit
PB: predicated region body
PF: predicated region fallthrough
CT: control target
= control target key end

     0   :  { %6 = vsyncpa [#allocation3], 0  ;;  %s208_s0 = inlined_call_operand.hbm [shape: f32[2,4,8,128], index: 0, kind: input, shape index: {}]   ;;  %s209_s1 = inlined_call_operand.hbm [shape: f32[8,128], index: 1, kind: output, shape index: {}]  }
   0x1   :  { %7 = vsyncpa [#allocation4], 0  ;;  %s12_s8 = sshll.u32 %s208_s0, 4  ;;  %s188_s9 = smov [#allocation2]   ;;  %s13_s8 = int_to_ptr.hbm [resolvable:$true] %s12_s8 }
   0x2   :  { %s14_s10 = sshll.u32 %s188_s9, 4  ;;  %s189_s11 = smov 128   ;;  %s15_s10 = int_to_ptr.vmem [resolvable:$true] %s14_s10 }
   0x3   :  { %s190_s12 = smov 8  }
   0x4   :  { %20 = dma.hbm_to_vmem [thread:$0]  %s13_s8, 1024, %s15_s10, [#allocation3], %s189_s11, %s189_s11, %s190_s12  }
   0x5   :  { %184 = dma.done.wait [#allocation3], 1024  }
   0x6   :  { %185 = vsyncadd [#allocation3], 4294966272  ;;  %v25_v0 = vld [vmem:[#allocation2] sm:$0xff]  ;;  %v29_v1 = vld [vmem:[#allocation2 + $0x10] sm:$0xff]  ;;  %s191_s0 = smov [#allocation5]   ;;  %s117_s16 = sshll.u32 %s209_s1, 4  ;;  %s118_s16 = int_to_ptr.hbm [resolvable:$true] %s117_s16 }
   0x7   :  { %v27_v2 = vld [vmem:[#allocation2 + $0x8] sm:$0xff]  ;;  %v31_v3 = vld [vmem:[#allocation2 + $0x18] sm:$0xff]  ;;  %v33_v4 = vld [vmem:[#allocation2 + $0x20] sm:$0xff]  ;;  %v40_v5 = vmul.f32 0.5, %v29_v1  ;;  %s115_s13 = sshll.u32 %s191_s0, 4  ;;  %s116_s13 = int_to_ptr.vmem [resolvable:$true] %s115_s13 }
   0x8   :  { %v35_v6 = vld [vmem:[#allocation2 + $0x28] sm:$0xff]  ;;  %v37_v7 = vld [vmem:[#allocation2 + $0x30] sm:$0xff]  ;;  %v39_v8 = vld [vmem:[#allocation2 + $0x38] sm:$0xff]  ;;  %v41_v9 = vmul.f32 0.5, %v31_v3  ;;  %v61_v20 = vmul.f32 %v31_v3, %v29_v1 }
   0x9   :  { %v42_v10 = vmul.f32 0.5, %v37_v7  ;;  %v43_v11 = vmul.f32 0.5, %v39_v8  ;;  %v44_v12 = vsub.f32 %v25_v0, %v40_v5  ;;  %v46_v13 = vadd.f32 %v40_v5, %v25_v0 }
   0xa   :  { %v45_v14 = vsub.f32 %v27_v2, %v41_v9  ;;  %v47_v15 = vadd.f32 %v41_v9, %v27_v2  ;;  %v62_v21 = vmul.f32 %v39_v8, %v37_v7 }
   0xb   :  { %v48_v16 = vsub.f32 %v33_v4, %v42_v10  ;;  %v49_v17 = vsub.f32 %v35_v6, %v43_v11  ;;  %v50_v18 = vadd.f32 %v42_v10, %v33_v4  ;;  %v51_v19 = vadd.f32 %v43_v11, %v35_v6 }
   0xc   :  { %v63_v36 = vadd.f32 %v62_v21, %v61_v20 }
   0xd   :  { %v52_v22 = vmax.f32 %v44_v12, %v48_v16  ;;  %v53_v23 = vmax.f32 %v45_v14, %v49_v17  ;;  %v54_v24 = vmin.f32 %v46_v13, %v50_v18  ;;  %v55_v25 = vmin.f32 %v47_v15, %v51_v19 }
   0xe   :  { %v81_v26 = vmin.f32 %v44_v12, %v48_v16  ;;  %v82_v27 = vmin.f32 %v45_v14, %v49_v17  ;;  %v83_v28 = vmax.f32 %v46_v13, %v50_v18  ;;  %v84_v29 = vmax.f32 %v47_v15, %v51_v19 }
   0xf   :  { %v56_v30 = vsub.f32 %v54_v24, %v52_v22  ;;  %v58_v31 = vsub.f32 %v55_v25, %v53_v23 }
  0x10   :  { %v85_v32 = vsub.f32 %v83_v28, %v81_v26  ;;  %v86_v33 = vsub.f32 %v84_v29, %v82_v27 }
  0x11   :  { %v57_v34 = vmax.f32 %v56_v30, 0.0  ;;  %v59_v35 = vmax.f32 %v58_v31, 0.0 }
  0x12   :  { %v87_v37 = vmul.f32 %v86_v33, %v85_v32 }
  0x13   :  { %v60_v38 = vmul.f32 %v59_v35, %v57_v34 }
  0x14   :  { %v89_v39 = vmax.f32 %v87_v37, 1e-16 }
  0x15   :  { %v64_v40 = vsub.f32 %v63_v36, %v60_v38 }
  0x16   :  { %132 = vrcp.f32 %v89_v39  ;;  %v101_v44 = vand.u32 2147483648, %v89_v39  ;;  %vm95_vm0 = vweird.f32 %v89_v39  ;;  %v99_v47 = vand.u32 2147483647, %v89_v39 }
  0x17   :  { %v65_v41 = vadd.f32 1e-16, %v64_v40  ;;  %v88_v56 = vsub.f32 %v87_v37, %v64_v40 }
  0x18   :  { %v102_v51 = vor.u32 1.1754944e-38, %v101_v44  ;;  %vm100_vm5 = vcmp.eq.f32.partialorder %v99_v47, 8.507059e+37 }
  0x19   :  { %134 = vrcp.f32 %v65_v41  ;;  %v77_v49 = vand.u32 2147483648, %v65_v41  ;;  %vm71_vm2 = vweird.f32 %v65_v41  ;;  %v75_v53 = vand.u32 2147483647, %v65_v41 }
  0x1b   :  { %v78_v57 = vor.u32 1.1754944e-38, %v77_v49  ;;  %vm76_vm7 = vcmp.eq.f32.partialorder %v75_v53, 8.507059e+37 }
  0x1c   :  { %v133_v42 = vpop.eup %132 }
  0x1d   :  { %v91_v43 = vmul.f32 %v133_v42, %v89_v39  ;;  %vm96_vm1 = vweird.f32 %v133_v42 }
  0x1e   :  { %vm97_vm4 = vmor %vm95_vm0, %vm96_vm1 }
  0x1f   :  { %v135_v45 = vpop.eup %134  ;;  %v92_v46 = vsub.f32 1.0, %v91_v43 }
  0x20   :  { %v67_v48 = vmul.f32 %v135_v45, %v65_v41  ;;  %vm72_vm3 = vweird.f32 %v135_v45 }
  0x21   :  { %v93_v50 = vmul.f32 %v133_v42, %v92_v46  ;;  %vm73_vm6 = vmor %vm71_vm2, %vm72_vm3 }
  0x22   :  { %v68_v52 = vsub.f32 1.0, %v67_v48 }
  0x23   :  { %v94_v54 = vadd.f32 %v133_v42, %v93_v50 }
  0x24   :  { %v69_v55 = vmul.f32 %v135_v45, %v68_v52 }
  0x25   :  { %v98_v58 = vsel %vm97_vm4, %v133_v42, %v94_v54 }
  0x26   :  { %v70_v59 = vadd.f32 %v135_v45, %v69_v55  ;;  %v103_v60 = vsel %vm100_vm5, %v102_v51, %v98_v58 }
  0x27   :  { %v104_v62 = vmul.f32 %v103_v60, %v88_v56 }
  0x28   :  { %v74_v61 = vsel %vm73_vm6, %v135_v45, %v70_v59 }
  0x29   :  { %v79_v63 = vsel %vm76_vm7, %v78_v57, %v74_v61 }
  0x2a   :  { %v80_v0 = vmul.f32 %v79_v63, %v60_v38 }
  0x2c   :  { %v105_v1 = vsub.f32 %v80_v0, %v104_v62 }
  0x2e   :  { %v127_v2 = vclamps-f32 %v105_v1, 1.0 }
  0x30   :  { %v108_v3 = vsub.f32 1.0, %v127_v2 }
  0x32   :  { %109 = vst [vmem:[#allocation5] sm:$0xff] %v108_v3 }
  0x33   :  { %120 = dma.vmem_to_hbm [thread:$0]  %s116_s13, 128, %s118_s16, [#allocation4]  }
  0x34   :  { %186 = dma.done.wait [#allocation4], 128  }
  0x35   :  { %187 = vsyncadd [#allocation4], 4294967168 }
  0x36   :  { %125 = vsyncpa [#allocation3], 1 }
  0x37   :  { %126 = vsyncpa [#allocation4], 1 }

</bundles_post_ra>
